<compile_context>
chip_gen: v6e
topology: v6e:2x2x1
jax: 0.10.0
libtpu: 0.0.40
codegen_flags: <defaults>
</compile_context>

<pallas_src>
import functools

import jax
import jax.numpy as jnp
from jax.experimental import pallas as pl
from jax.experimental.pallas import tpu as pltpu

LANE = 128


def _round_up(n, m):
    return ((n + m - 1) // m) * m


def actor_kernel(x_ref, w1_ref, b1_ref, w2_ref, b2_ref, w3_ref, b3_ref, o_ref,
                 *, action_dim):
    # Cast the streamed activation to the matmul dtype in-kernel (hidden under
    # the input DMA; avoids a separate wrapper-side XLA pass over x).
    x = x_ref[...].astype(w1_ref.dtype)

    # Layer 1: MXU matmul with f32 accumulate; bias + ReLU in f32.
    h1 = jnp.dot(x, w1_ref[...], preferred_element_type=jnp.float32)
    h1 = jnp.maximum(h1 + b1_ref[...], 0.0)

    # Layer 2.
    h2 = jnp.dot(h1.astype(w2_ref.dtype), w2_ref[...],
                 preferred_element_type=jnp.float32)
    h2 = jnp.maximum(h2 + b2_ref[...], 0.0)

    # Output layer -> logits over a lane-padded action axis (padded columns
    # carry a -1e30 bias in f32 => exactly zero probability after softmax).
    logits = jnp.dot(h2.astype(w3_ref.dtype), w3_ref[...],
                     preferred_element_type=jnp.float32) + b3_ref[...]

    # Numerically-stable softmax; EXACT normalization so probs sum to 1.
    m = jnp.max(logits, axis=-1, keepdims=True)
    e = jnp.exp(logits - m)
    probs = e / jnp.sum(e, axis=-1, keepdims=True)

    # Lane-narrow store: only the real action columns go back to HBM
    # (slice stays inside the first (8,128) lane tile -> cheap masked vst).
    o_ref[...] = probs[:, :action_dim].astype(o_ref.dtype)


def actor_forward(x, params, *, tile_m=4096, matmul_dtype=jnp.bfloat16,
                  out_dtype=jnp.float32):
    """Full Actor MLP + softmax in a single fused Pallas kernel."""
    w1, b1, w2, b2, w3, b3 = params
    batch, state_dim = x.shape
    h1_dim = w1.shape[1]
    h2_dim = w2.shape[1]
    action_dim = w3.shape[1]

    # Pad the last layer's out-features to a full 128-lane width purely for
    # in-kernel compute; padded logits get a -1e30 bias (kept in f32!).
    n_pad = _round_up(action_dim, LANE)
    if n_pad != action_dim:
        w3p = jnp.pad(w3, ((0, 0), (0, n_pad - action_dim)))
        b3p = jnp.pad(b3, ((0, 0), (0, n_pad - action_dim)),
                      constant_values=-1e30)
    else:
        w3p, b3p = w3, b3

    # Batch tiling: weights stay resident; only x / out stream per grid step.
    # Aim for >= 2 grid steps (v7x megacore) when the batch allows blocks with
    # a sublane dim that is a multiple of 8; never jnp.pad x over the batch —
    # a ragged last block is clipped by Pallas on writeback.
    if batch <= 8:
        tm = batch                      # single full-dim block
    else:
        tm = min(tile_m, _round_up(pl.cdiv(batch, 2), 8))
    grid = (pl.cdiv(batch, tm),)

    # Dtype policy: matmul weights in `matmul_dtype`; biases (incl. -1e30
    # padding) stay f32; x is cast inside the kernel.
    w1c = w1.astype(matmul_dtype)
    w2c = w2.astype(matmul_dtype)
    w3c = w3p.astype(matmul_dtype)
    b1c = b1.astype(jnp.float32)
    b2c = b2.astype(jnp.float32)
    b3c = b3p.astype(jnp.float32)

    flops = 2 * batch * (state_dim * h1_dim + h1_dim * h2_dim + h2_dim * n_pad)
    bytes_accessed = (
        x.size * x.dtype.itemsize
        + sum(a.size * a.dtype.itemsize
              for a in (w1c, b1c, w2c, b2c, w3c, b3c))
        + batch * action_dim * jnp.dtype(out_dtype).itemsize)
    cost = pl.CostEstimate(flops=flops,
                           transcendentals=batch * n_pad,
                           bytes_accessed=bytes_accessed)

    resident = lambda a: pl.BlockSpec(a.shape, lambda i: (0, 0))
    kernel = functools.partial(actor_kernel, action_dim=action_dim)

    out = pl.pallas_call(
        kernel,
        out_shape=jax.ShapeDtypeStruct((batch, action_dim), out_dtype),
        grid=grid,
        in_specs=[
            pl.BlockSpec((tm, state_dim), lambda i: (i, 0)),   # x: streamed
            resident(w1c), resident(b1c),                      # weights/biases
            resident(w2c), resident(b2c),                      # resident in
            resident(w3c), resident(b3c),                      # VMEM
        ],
        out_specs=pl.BlockSpec((tm, action_dim), lambda i: (i, 0)),
        compiler_params=pltpu.CompilerParams(
            dimension_semantics=("parallel",)),                # v7x megacore
        cost_estimate=cost,
    )(x, w1c, b1c, w2c, b2c, w3c, b3c)

    return out


def init_params(key, state_dim, action_dim, hidden_sizes=(128, 64)):
    """Deterministic, PyTorch-Linear-style uniform init (synthetic weights)."""
    dims = [state_dim] + list(hidden_sizes) + [action_dim]
    params = []
    for i in range(len(dims) - 1):
        fan_in, fan_out = dims[i], dims[i + 1]
        key, kw, kb = jax.random.split(key, 3)
        bound = 1.0 / jnp.sqrt(fan_in)
        w = jax.random.uniform(kw, (fan_in, fan_out), jnp.float32, -bound, bound)
        b = jax.random.uniform(kb, (1, fan_out), jnp.float32, -bound, bound)
        params += [w, b]
    return tuple(params)


def actor_reference(x, params):
    """Pure-JAX reference for correctness checking."""
    w1, b1, w2, b2, w3, b3 = params
    h = jnp.maximum(x @ w1 + b1, 0.0)
    h = jnp.maximum(h @ w2 + b2, 0.0)
    logits = h @ w3 + b3
    return jax.nn.softmax(logits, axis=-1)


# TODO(synk): select_action's env-based masking / Categorical sampling and
# get_log_prob are host-side policy utilities, not part of the nn forward pass.

if __name__ == "__main__":
    key = jax.random.PRNGKey(0)
    state_dim, action_dim, batch = 32, 16, 8

    k_x, k_p = jax.random.split(key)
    x = jax.random.normal(k_x, (batch, state_dim), jnp.float32)
    params = init_params(k_p, state_dim, action_dim)

    ref = actor_reference(x, params)

    # f32 matmul path: tight tolerance; softmax normalization is exact.
    out_f32 = jax.block_until_ready(
        actor_forward(x, params, matmul_dtype=jnp.float32))
    assert out_f32.shape == (batch, action_dim)
    assert jnp.allclose(out_f32, ref, atol=1e-3, rtol=1e-3)
    assert jnp.allclose(jnp.sum(out_f32, axis=-1), 1.0, atol=1e-3)

    # Default bf16 matmul path (production config): loose elementwise
    # tolerance; the sum is still ~1 because the softmax is exact in f32.
    out_bf16 = jax.block_until_ready(actor_forward(x, params))
    assert out_bf16.shape == (batch, action_dim)
    assert jnp.allclose(out_bf16, ref, atol=2e-2, rtol=2e-2)
    assert jnp.allclose(jnp.sum(out_bf16, axis=-1), 1.0, atol=2e-3)

    # Multi-step grid path (>= 2 tiles so both v7x TensorCores get work).
    batch2 = 32
    x2 = jax.random.normal(jax.random.PRNGKey(1), (batch2, state_dim),
                           jnp.float32)
    ref2 = actor_reference(x2, params)
    out2 = jax.block_until_ready(
        actor_forward(x2, params, matmul_dtype=jnp.float32))
    assert out2.shape == (batch2, action_dim)
    assert jnp.allclose(out2, ref2, atol=1e-3, rtol=1e-3)
    assert jnp.allclose(jnp.sum(out2, axis=-1), 1.0, atol=1e-3)

    print("KERNEL_OK")
</pallas_src>

<mosaic_0001>
module attributes {stable_mosaic.version = 11 : i64} {
  func.func @actor_kernel(%arg0: i32, %arg1: memref<8x32xf32, #tpu.memory_space<vmem>>, %arg2: memref<32x128xf32, #tpu.memory_space<vmem>>, %arg3: memref<1x128xf32, #tpu.memory_space<vmem>>, %arg4: memref<128x64xf32, #tpu.memory_space<vmem>>, %arg5: memref<1x64xf32, #tpu.memory_space<vmem>>, %arg6: memref<64x128xf32, #tpu.memory_space<vmem>>, %arg7: memref<1x128xf32, #tpu.memory_space<vmem>>, %arg8: memref<8x16xf32, #tpu.memory_space<vmem>>) attributes {dimension_semantics = [#tpu.dimension_semantics<parallel>], iteration_bounds = array<i64: 1>, scalar_prefetch = 0 : i64, scratch_operands = 0 : i64, tpu.core_type = #tpu.core_type<tc>, window_params = [{transform_indices = @transform_0, window_bounds = array<i64: 8, 32>}, {pipeline_mode = #tpu.pipeline_mode<synchronous>, transform_indices = @transform_1, window_bounds = array<i64: 32, 128>}, {pipeline_mode = #tpu.pipeline_mode<synchronous>, transform_indices = @transform_2, window_bounds = array<i64: 1, 128>}, {pipeline_mode = #tpu.pipeline_mode<synchronous>, transform_indices = @transform_3, window_bounds = array<i64: 128, 64>}, {pipeline_mode = #tpu.pipeline_mode<synchronous>, transform_indices = @transform_4, window_bounds = array<i64: 1, 64>}, {pipeline_mode = #tpu.pipeline_mode<synchronous>, transform_indices = @transform_5, window_bounds = array<i64: 64, 128>}, {pipeline_mode = #tpu.pipeline_mode<synchronous>, transform_indices = @transform_6, window_bounds = array<i64: 1, 128>}, {transform_indices = @transform_7, window_bounds = array<i64: 8, 16>}]} {
    %c0 = arith.constant 0 : index
    %c0_0 = arith.constant 0 : index
    %0 = vector.load %arg1[%c0, %c0_0] : memref<8x32xf32, #tpu.memory_space<vmem>>, vector<8x32xf32>
    %c0_1 = arith.constant 0 : index
    %c0_2 = arith.constant 0 : index
    %1 = vector.load %arg2[%c0_1, %c0_2] : memref<32x128xf32, #tpu.memory_space<vmem>>, vector<32x128xf32>
    %cst = arith.constant dense<0.000000e+00> : vector<8x128xf32>
    %2 = tpu.matmul %0, %1, %cst {dimension_numbers = #tpu.dot_dimension_numbers<[1], [0], [0], [1], [0, 0, 1, 1], [], []>} : vector<8x32xf32>, vector<32x128xf32>, vector<8x128xf32> -> vector<8x128xf32>
    %c0_3 = arith.constant 0 : index
    %c0_4 = arith.constant 0 : index
    %3 = vector.load %arg3[%c0_3, %c0_4] : memref<1x128xf32, #tpu.memory_space<vmem>>, vector<1x128xf32>
    %4 = vector.broadcast %3 : vector<1x128xf32> to vector<8x128xf32>
    %5 = arith.addf %2, %4 : vector<8x128xf32>
    %cst_5 = arith.constant 0.000000e+00 : f32
    %6 = vector.broadcast %cst_5 : f32 to vector<8x128xf32>
    %7 = arith.maximumf %5, %6 : vector<8x128xf32>
    %c0_6 = arith.constant 0 : index
    %c0_7 = arith.constant 0 : index
    %8 = vector.load %arg4[%c0_6, %c0_7] : memref<128x64xf32, #tpu.memory_space<vmem>>, vector<128x64xf32>
    %cst_8 = arith.constant dense<0.000000e+00> : vector<8x64xf32>
    %9 = tpu.matmul %7, %8, %cst_8 {dimension_numbers = #tpu.dot_dimension_numbers<[1], [0], [0], [1], [0, 0, 1, 1], [], []>} : vector<8x128xf32>, vector<128x64xf32>, vector<8x64xf32> -> vector<8x64xf32>
    %c0_9 = arith.constant 0 : index
    %c0_10 = arith.constant 0 : index
    %10 = vector.load %arg5[%c0_9, %c0_10] : memref<1x64xf32, #tpu.memory_space<vmem>>, vector<1x64xf32>
    %11 = vector.broadcast %10 : vector<1x64xf32> to vector<8x64xf32>
    %12 = arith.addf %9, %11 : vector<8x64xf32>
    %cst_11 = arith.constant 0.000000e+00 : f32
    %13 = vector.broadcast %cst_11 : f32 to vector<8x64xf32>
    %14 = arith.maximumf %12, %13 : vector<8x64xf32>
    %c0_12 = arith.constant 0 : index
    %c0_13 = arith.constant 0 : index
    %15 = vector.load %arg6[%c0_12, %c0_13] : memref<64x128xf32, #tpu.memory_space<vmem>>, vector<64x128xf32>
    %cst_14 = arith.constant dense<0.000000e+00> : vector<8x128xf32>
    %16 = tpu.matmul %14, %15, %cst_14 {dimension_numbers = #tpu.dot_dimension_numbers<[1], [0], [0], [1], [0, 0, 1, 1], [], []>} : vector<8x64xf32>, vector<64x128xf32>, vector<8x128xf32> -> vector<8x128xf32>
    %c0_15 = arith.constant 0 : index
    %c0_16 = arith.constant 0 : index
    %17 = vector.load %arg7[%c0_15, %c0_16] : memref<1x128xf32, #tpu.memory_space<vmem>>, vector<1x128xf32>
    %18 = vector.broadcast %17 : vector<1x128xf32> to vector<8x128xf32>
    %19 = arith.addf %16, %18 : vector<8x128xf32>
    %cst_17 = arith.constant dense<0xFF800000> : vector<8xf32>
    %20 = vector.multi_reduction <maximumf>, %19, %cst_17 [1] : vector<8x128xf32> to vector<8xf32>
    %21 = vector.shape_cast %20 : vector<8xf32> to vector<8x1xf32>
    %22 = vector.broadcast %21 : vector<8x1xf32> to vector<8x128xf32>
    %23 = arith.subf %19, %22 : vector<8x128xf32>
    %24 = math.exp %23 : vector<8x128xf32>
    %cst_18 = arith.constant dense<0.000000e+00> : vector<8xf32>
    %25 = vector.multi_reduction <add>, %24, %cst_18 [1] : vector<8x128xf32> to vector<8xf32>
    %26 = vector.shape_cast %25 : vector<8xf32> to vector<8x1xf32>
    %27 = vector.broadcast %26 : vector<8x1xf32> to vector<8x128xf32>
    %28 = arith.divf %24, %27 : vector<8x128xf32>
    %29 = vector.extract_strided_slice %28 {offsets = [0, 0], sizes = [8, 16], strides = [1, 1]} : vector<8x128xf32> to vector<8x16xf32>
    %c0_19 = arith.constant 0 : index
    %c0_20 = arith.constant 0 : index
    %30 = vector.load %arg8[%c0_19, %c0_20] : memref<8x16xf32, #tpu.memory_space<vmem>>, vector<8x16xf32>
    tpu.vector_store %arg8[%c0_19, %c0_20], %29 {strides = array<i32>} : memref<8x16xf32, #tpu.memory_space<vmem>>, vector<8x16xf32>,
    return
  }
  func.func @transform_0(%arg0: i32) -> (i32, i32) {
    %c0_i32 = arith.constant 0 : i32
    %c0_i32_0 = arith.constant 0 : i32
    return %arg0, %c0_i32 : i32, i32
  }
  func.func @transform_1(%arg0: i32) -> (i32, i32) {
    %c0_i32 = arith.constant 0 : i32
    %c0_i32_0 = arith.constant 0 : i32
    %c0_i32_1 = arith.constant 0 : i32
    return %c0_i32, %c0_i32_0 : i32, i32
  }
  func.func @transform_2(%arg0: i32) -> (i32, i32) {
    %c0_i32 = arith.constant 0 : i32
    %c0_i32_0 = arith.constant 0 : i32
    %c0_i32_1 = arith.constant 0 : i32
    return %c0_i32, %c0_i32_0 : i32, i32
  }
  func.func @transform_3(%arg0: i32) -> (i32, i32) {
    %c0_i32 = arith.constant 0 : i32
    %c0_i32_0 = arith.constant 0 : i32
    %c0_i32_1 = arith.constant 0 : i32
    return %c0_i32, %c0_i32_0 : i32, i32
  }
  func.func @transform_4(%arg0: i32) -> (i32, i32) {
    %c0_i32 = arith.constant 0 : i32
    %c0_i32_0 = arith.constant 0 : i32
    %c0_i32_1 = arith.constant 0 : i32
    return %c0_i32, %c0_i32_0 : i32, i32
  }
  func.func @transform_5(%arg0: i32) -> (i32, i32) {
    %c0_i32 = arith.constant 0 : i32
    %c0_i32_0 = arith.constant 0 : i32
    %c0_i32_1 = arith.constant 0 : i32
    return %c0_i32, %c0_i32_0 : i32, i32
  }
  func.func @transform_6(%arg0: i32) -> (i32, i32) {
    %c0_i32 = arith.constant 0 : i32
    %c0_i32_0 = arith.constant 0 : i32
    %c0_i32_1 = arith.constant 0 : i32
    return %c0_i32, %c0_i32_0 : i32, i32
  }
  func.func @transform_7(%arg0: i32) -> (i32, i32) {
    %c0_i32 = arith.constant 0 : i32
    %c0_i32_0 = arith.constant 0 : i32
    return %arg0, %c0_i32 : i32, i32
  }
}

</mosaic_0001>

<bundles_post_ra>
// kernel: tpu_custom_call.1
= control target key start
LH: loop header
LB: loop body
LE: loop exit
PB: predicated region body
PF: predicated region fallthrough
CT: control target
= control target key end

     0   :  { %v452_v1 = vmov 0.0   ;;  %vm453_vm0 = vmmov 0   ;;  %vm39_vm1 = vcmask 261120   ;;  %s628_s0 = inlined_call_operand.vmem [shape: f32[8,32], index: 0, kind: input, shape index: {}]   ;;  %s629_s1 = inlined_call_operand.vmem [shape: f32[32,128], index: 1, kind: input, shape index: {}]   ;;  %s630_s2 = inlined_call_operand.vmem [shape: f32[1,128], index: 2, kind: input, shape index: {}]   ;;  %s631_s3 = inlined_call_operand.vmem [shape: f32[128,64], index: 3, kind: input, shape index: {}]   ;;  %s632_s4 = inlined_call_operand.vmem [shape: f32[1,64], index: 4, kind: input, shape index: {}]   ;;  %s633_s5 = inlined_call_operand.vmem [shape: f32[64,128], index: 5, kind: input, shape index: {}]   ;;  %s634_s6 = inlined_call_operand.vmem [shape: f32[1,128], index: 6, kind: input, shape index: {}]   ;;  %s635_s7 = inlined_call_operand.hbm [shape: f32[8,16], index: 7, kind: output, shape index: {}]  }
   0x1   :  { %v31_v0 = vld [vmem:[%s629_s1 + $0x18] sm:$0xff]  ;;  %358 = vmatprep.subr.mxu0 %v452_v1  ;;  %v30_v2 = vld [vmem:[%s629_s1 + $0x10] sm:$0xff]  ;;  %366 = vmatprep.mubr.msk.f32.mxu0 %vm453_vm0, %v452_v1  ;;  %v29_v5 = vld [vmem:[%s629_s1 + $0x8] sm:$0xff] }
   0x2   :  { %v129_v3 = vld [vmem:[%s631_s3 + $0x78] sm:$0xff]  ;;  %359 = vmatpush3.msra.mxu0 %v31_v0  ;;  %369 = vmatprep.subr.mxu1 %v452_v1  ;;  %v128_v4 = vld [vmem:[%s631_s3 + $0x70] sm:$0xff]  ;;  %v127_v6 = vld [vmem:[%s631_s3 + $0x68] sm:$0xff] }
   0x3   :  { %360 = vmatprep.subr.mxu0 %v452_v1  ;;  %370 = vmatpush3.msra.mxu1 %v129_v3  ;;  %v28_v7 = vld [vmem:[%s629_s1] sm:$0xff] }
   0x4   :  { %361 = vmatpush3.msra.mxu0 %v30_v2  ;;  %371 = vmatprep.subr.mxu1 %v452_v1  ;;  %v27_v8 = vld [vmem:[%s628_s0] sm:$0xff] }
   0x5   :  { %362 = vmatprep.subr.mxu0 %v452_v1  ;;  %372 = vmatpush3.msra.mxu1 %v128_v4  ;;  %v126_v9 = vld [vmem:[%s631_s3 + $0x60] sm:$0xff] }
   0x6   :  { %363 = vmatpush3.msra.mxu0 %v29_v5  ;;  %373 = vmatprep.subr.mxu1 %v452_v1 }
   0x7   :  { %12 = vsyncpa [#allocation3], 0  ;;  %364 = vmatprep.subr.mxu0 %v452_v1  ;;  %374 = vmatpush3.msra.mxu1 %v127_v6  ;;  %v125_v10 = vld [vmem:[%s631_s3 + $0x58] sm:$0xff]  ;;  %v124_v11 = vld [vmem:[%s631_s3 + $0x50] sm:$0xff]  ;;  %vm223_vm2 = vcmask 523264   ;;  %vm306_vm3 = vcmask 130048  }
   0x8   :  { %365 = vmatpush3.msra.mxu0 %v28_v7  ;;  %375 = vmatprep.subr.mxu1 %v452_v1  ;;  %v123_v12 = vld [vmem:[%s631_s3 + $0x48] sm:$0xff]  ;;  %v122_v13 = vld [vmem:[%s631_s3 + $0x40] sm:$0xff]  ;;  %v121_v14 = vld [vmem:[%s631_s3 + $0x38] sm:$0xff] }
   0x9   :  { %367 = vmatmul.mubr.msk.f32.vlgmr.msra.gmra.mxu0 %vm39_vm1, %v27_v8  ;;  %376 = vmatpush3.msra.mxu1 %v126_v9  ;;  %v120_v15 = vld [vmem:[%s631_s3 + $0x30] sm:$0xff]  ;;  %v119_v16 = vld [vmem:[%s631_s3 + $0x28] sm:$0xff]  ;;  %v118_v17 = vld [vmem:[%s631_s3 + $0x20] sm:$0xff] }
   0xa   :  { %377 = vmatprep.subr.mxu1 %v452_v1  ;;  %401 = vmatprep.mubr.msk.f32.mxu1 %vm453_vm0, %v452_v1  ;;  %v117_v18 = vld [vmem:[%s631_s3 + $0x18] sm:$0xff]  ;;  %v116_v19 = vld [vmem:[%s631_s3 + $0x10] sm:$0xff]  ;;  %v115_v20 = vld [vmem:[%s631_s3 + $0x8] sm:$0xff] }
   0xb   :  { %378 = vmatpush3.msra.mxu1 %v125_v10  ;;  %404 = vmatprep.subr.mxu0 %v452_v1  ;;  %v114_v21 = vld [vmem:[%s631_s3] sm:$0xff]  ;;  %v215_v22 = vld [vmem:[%s633_s5 + $0x38] sm:$0xff]  ;;  %v214_v23 = vld [vmem:[%s633_s5 + $0x30] sm:$0xff] }
   0xc   :  { %379 = vmatprep.subr.mxu1 %v452_v1  ;;  %420 = vmatprep.mubr.msk.f32.mxu0 %vm453_vm0, %v452_v1  ;;  %v213_v24 = vld [vmem:[%s633_s5 + $0x28] sm:$0xff]  ;;  %v212_v25 = vld [vmem:[%s633_s5 + $0x20] sm:$0xff]  ;;  %v211_v26 = vld [vmem:[%s633_s5 + $0x18] sm:$0xff] }
   0xd   :  { %380 = vmatpush3.msra.mxu1 %v124_v11  ;;  %405 = vmatpush3.msra.mxu0 %v215_v22  ;;  %v322_v27 = vld [vmem:[%s630_s2] ss:$0 sm:$0xff]  ;;  %v210_v32 = vld [vmem:[%s633_s5 + $0x10] sm:$0xff]  ;;  %v209_v33 = vld [vmem:[%s633_s5 + $0x8] sm:$0xff] }
   0xe   :  { %381 = vmatprep.subr.mxu1 %v452_v1  ;;  %406 = vmatprep.subr.mxu0 %v452_v1  ;;  %v208_v34 = vld [vmem:[%s633_s5] sm:$0xff] }
   0xf   :  { %382 = vmatpush3.msra.mxu1 %v123_v12  ;;  %407 = vmatpush3.msra.mxu0 %v214_v23  ;;  %v324_v35 = vld [vmem:[%s632_s4] ss:$0 sm:$0xff]  ;;  %s454_s4 = smov [#allocation2]  }
  0x10   :  { %383 = vmatprep.subr.mxu1 %v452_v1  ;;  %408 = vmatprep.subr.mxu0 %v452_v1  ;;  %v325_v40 = vld [vmem:[%s634_s6] ss:$0 sm:$0xff]  ;;  %s314_s5 = sshll.u32 %s454_s4, 4  ;;  %s315_s5 = int_to_ptr.vmem [resolvable:$true] %s314_s5 }
  0x11   :  { %384 = vmatpush3.msra.mxu1 %v122_v13  ;;  %409 = vmatpush3.msra.mxu0 %v213_v24  ;;  %s430_s6 = scalar_lea.vmem %s315_s5, 128  ;;  %p435_p1 = scmp.lt.s32.totalorder %s315_s5, %s315_s5 }
  0x12   :  { %385 = vmatprep.subr.mxu1 %v452_v1  ;;  %410 = vmatprep.subr.mxu0 %v452_v1  ;;  %p431_p0 = scmp.ne.s32.totalorder %s315_s5, %s430_s6  ;;  %p436_p2 = scmp.lt.s32.totalorder %s430_s6, %s430_s6 }
  0x13   :  { %386 = vmatpush3.msra.mxu1 %v121_v14  ;;  %411 = vmatpush3.msra.mxu0 %v212_v25 }
  0x14   :  { %387 = vmatprep.subr.mxu1 %v452_v1  ;;  %412 = vmatprep.subr.mxu0 %v452_v1  ;;  %p437_p3 = por %p436_p2, %p435_p1 }
  0x15   :  { %388 = vmatpush3.msra.mxu1 %v120_v15  ;;  %413 = vmatpush3.msra.mxu0 %v211_v26 }
  0x16   :  { %389 = vmatprep.subr.mxu1 %v452_v1  ;;  %414 = vmatprep.subr.mxu0 %v452_v1  ;;  %p438_p4 = pnand %p437_p3, %p431_p0 }
  0x17   :  { %390 = vmatpush3.msra.mxu1 %v119_v16  ;;  %415 = vmatpush3.msra.mxu0 %v210_v32 }
  0x18   :  { %391 = vmatprep.subr.mxu1 %v452_v1  ;;  %416 = vmatprep.subr.mxu0 %v452_v1 }
  0x19   :  { %392 = vmatpush3.msra.mxu1 %v118_v17  ;;  %417 = vmatpush3.msra.mxu0 %v209_v33 }
  0x1a   :  { %393 = vmatprep.subr.mxu1 %v452_v1  ;;  %418 = vmatprep.subr.mxu0 %v452_v1 }
  0x1b   :  { %394 = vmatpush3.msra.mxu1 %v117_v18  ;;  %419 = vmatpush3.msra.mxu0 %v208_v34 }
  0x1c   :  { %395 = vmatprep.subr.mxu1 %v452_v1 }
  0x1d   :  { %396 = vmatpush3.msra.mxu1 %v116_v19 }
  0x1e   :  { %397 = vmatprep.subr.mxu1 %v452_v1 }
  0x1f   :  { %398 = vmatpush3.msra.mxu1 %v115_v20 }
  0x20   :  { %399 = vmatprep.subr.mxu1 %v452_v1 }
  0x21   :  { %400 = vmatpush3.msra.mxu1 %v114_v21 }
  0xc9   :  { %v109_v28 = vpop.f32.mrf.mxu0 }
  0xca   :  { %v110_v29 = vadd.f32 %v322_v27, %v109_v28 }
  0xcb   :  { %v368_v30 = vpop.f32.mrf.mxu0 }
  0xcc   :  { %v113_v31 = vmax.f32 %v110_v29, 0.0 }
  0xce   :  { %402 = vmatmul.mubr.f32.vlgmr.msra.gmra.mxu1 %v113_v31 }
 0x18e   :  { %v203_v36 = vpop.f32.mrf.mxu1 }
 0x18f   :  { %v204_v37 = vadd.f32 %v324_v35, %v203_v36 }
 0x190   :  { %v403_v38 = vpop.f32.mrf.mxu1 }
 0x191   :  { %v207_v39 = vmax.f32 %v204_v37, 0.0 }
 0x193   :  { %421 = vmatmul.mubr.msk.f32.vlgmr.msra.gmra.mxu0 %vm223_vm2, %v207_v39 }
 0x253   :  { %v293_v41 = vpop.f32.mrf.mxu0 }
 0x254   :  { %v294_v42 = vadd.f32 %v325_v40, %v293_v41 }
 0x255   :  { %v422_v43 = vpop.f32.mrf.mxu0 }
 0x256   :  { %297 = vmax.xlane.f32.xlu0 %v294_v42 }
 0x2df   :  { %v298_v44 = vpop.xlane.xlu0 %297 }
 0x2e0   :  { %v299_v45 = vsub.f32 %v294_v42, %v298_v44 }
 0x2e2   :  { %v300_v46 = vmul.f32 1.442695, %v299_v45 }
 0x2e4   :  { %426 = vpow2.f32 %v300_v46 }
 0x2f1   :  { %v427_v47 = vpop.eup %426 }
 0x2f2   :  { %302 = vadd.xlane.f32.xlu0 %v427_v47 }
 0x37b   :  { %v303_v48 = vpop.xlane.xlu0 %302 }
 0x37c   :  { %428 = vrcp.f32 %v303_v48 }
 0x389   :  { %v429_v49 = vpop.eup %428 }
 0x38a   :  { %v305_v50 = vmul.f32 %v429_v49, %v427_v47 }
 0x38c   :  { %307 = vst.msk [vmem:[#allocation2] sm:$0xff] %vm306_vm3, %v305_v50 }
 0x38d   :  { %441 = shalt.err (!%p438_p4)
}
 0x38e   :  { %317 = dma.vmem_to_hbm [thread:$0]  %s315_s5, 128, %s635_s7, [#allocation3]  }
 0x38f   :  { %450 = dma.done.wait [#allocation3], 128  }
 0x390   :  { %451 = vsyncadd [#allocation3], 4294967168 }
 0x391   :  { %321 = vsyncpa [#allocation3], 1 }

</bundles_post_ra>
